<compile_context>
chip_gen: v7x
topology: tpu7x:2x2x1
jax: 0.10.0
libtpu: 0.0.40
codegen_flags: <defaults>
</compile_context>

<pallas_src>
import jax
import jax.numpy as jnp
from jax.experimental import pallas as pl
from jax.experimental.pallas import tpu as pltpu


def _round_up(n, m):
    return ((n + m - 1) // m) * m


# ----------------------------------------------------------------------------
# Fused kernel: y = VQ(x @ Wi + bi) @ Wo + bo, plus indices and per-row sq-err.
# One grid step processes TILE_M rows.
# ----------------------------------------------------------------------------
def _fused_kernel(x_ref, w_in_ref, b_in_ref, cbT_ref, cb_ref, c2_ref,
                  w_out_ref, b_out_ref, o_ref, idx_ref, sqerr_ref):
    # ---- Linear 1 (MXU) with fused bias epilogue -> f32 activations ---------
    h = jnp.dot(x_ref[...], w_in_ref[...], preferred_element_type=jnp.float32)
    h = h + b_in_ref[...].astype(jnp.float32)                   # (TM, Dp) f32

    # ---- VQ: argmin_c ||h - c||^2 == argmin_c (||c||^2 - 2 h.c) -------------
    cross = jnp.dot(h.astype(cbT_ref.dtype), cbT_ref[...],
                    preferred_element_type=jnp.float32)          # (TM, Cp)
    score = c2_ref[...] - 2.0 * cross                            # padded codes carry +1e30
    minv = jnp.min(score, axis=-1, keepdims=True)                # (TM, 1)
    lane = jax.lax.broadcasted_iota(jnp.int32, score.shape, 1)
    idx = jnp.min(jnp.where(score == minv, lane, score.shape[1]),
                  axis=-1, keepdims=True)                        # first match (torch.argmin-style)
    idx_ref[...] = idx

    # gather winning code via one-hot matmul (MXU); f32 accumulation is exact
    onehot = (lane == idx).astype(cb_ref.dtype)                  # (TM, Cp)
    q = jnp.dot(onehot, cb_ref[...],
                preferred_element_type=jnp.float32)              # (TM, Dp) f32

    # ---- Linear 2 (MXU) with fused bias epilogue -----------------------------
    y = jnp.dot(q.astype(w_out_ref.dtype), w_out_ref[...],
                preferred_element_type=jnp.float32)
    o_ref[...] = (y + b_out_ref[...].astype(jnp.float32)).astype(o_ref.dtype)

    # ---- per-row commit-loss partials (sum over D on-chip) -------------------
    diff = q - h
    sqerr_ref[...] = jnp.sum(diff * diff, axis=-1, keepdims=True)


def _pick_tile_m(M, D_pad, C_pad, itemsize, vmem_budget):
    """Largest power-of-two row tile (<=512) whose working set fits the budget."""
    # grid-invariant operands (double-buffered by the pipeline, conservative)
    const_bytes = 2 * itemsize * (2 * D_pad * D_pad + 2 * C_pad * D_pad + 2 * D_pad) \
        + 2 * 4 * C_pad
    tile = 512
    while tile > 8:
        per_tile = (2 * 2 * tile * D_pad * itemsize        # x tile + out tile, double-buffered
                    + 2 * 2 * tile * 4                      # idx + sqerr, double-buffered
                    + 4 * tile * max(D_pad, C_pad) * 4)     # f32 temporaries (h, score, q, y)
        if const_bytes + per_tile <= vmem_budget:
            break
        tile //= 2
    tile = max(tile, 8)
    return min(tile, _round_up(M, 8))


# ----------------------------------------------------------------------------
# The Sequential forward: Linear -> VectorQuantize -> Linear  (single kernel)
# ----------------------------------------------------------------------------
def sequential_forward(x, params):
    B, S, D = x.shape
    codebook = params["codebook"]
    C = codebook.shape[0]
    dt = x.dtype
    itemsize = jnp.dtype(dt).itemsize

    M = B * S
    D_pad = _round_up(D, 128)                     # lane-dense matmul / store dims
    C_pad = _round_up(C, 128)

    VMEM_LIMIT = 32 * 1024 * 1024
    TILE_M = _pick_tile_m(M, D_pad, C_pad, itemsize, vmem_budget=24 * 1024 * 1024)
    M_pad = _round_up(M, TILE_M)
    n_tiles = M_pad // TILE_M

    # ---- zero-padded, pre-laid-out operands (plain JAX, once per call) ----
    x_p = jnp.zeros((M_pad, D_pad), dt).at[:M, :D].set(x.reshape(M, D))
    w_in_p = jnp.zeros((D_pad, D_pad), dt).at[:D, :D].set(params["w_in"].astype(dt))
    b_in_p = jnp.zeros((1, D_pad), dt).at[0, :D].set(params["b_in"].astype(dt))
    w_out_p = jnp.zeros((D_pad, D_pad), dt).at[:D, :D].set(params["w_out"].astype(dt))
    b_out_p = jnp.zeros((1, D_pad), dt).at[0, :D].set(params["b_out"].astype(dt))

    cb_p = jnp.zeros((C_pad, D_pad), dt).at[:C, :D].set(codebook.astype(dt))
    cbT_p = cb_p.T                                               # (D_pad, C_pad): no in-kernel .T
    c2 = jnp.sum(cb_p.astype(jnp.float32) ** 2, axis=1)
    c2 = jnp.where(jnp.arange(C_pad) < C, c2, jnp.float32(1e30)).reshape(1, C_pad)

    # ---- cost hint for XLA scheduling around the custom call ----
    flops = 4 * M_pad * D_pad * (D_pad + C_pad)
    bytes_accessed = (
        (x_p.size + w_in_p.size + b_in_p.size + cb_p.size + cbT_p.size
         + w_out_p.size + b_out_p.size) * itemsize
        + c2.size * 4
        + M_pad * D_pad * itemsize        # out
        + M_pad * 4 * 2                   # idx + per-row sq-err
    )
    cost = pl.CostEstimate(flops=flops, transcendentals=0,
                           bytes_accessed=bytes_accessed)

    out_p, idx_p, sqerr_rows = pl.pallas_call(
        _fused_kernel,
        out_shape=(
            jax.ShapeDtypeStruct((M_pad, D_pad), dt),
            jax.ShapeDtypeStruct((M_pad, 1), jnp.int32),
            jax.ShapeDtypeStruct((M_pad, 1), jnp.float32),
        ),
        grid=(n_tiles,),
        in_specs=[
            pl.BlockSpec((TILE_M, D_pad), lambda i: (i, 0)),   # x tile
            pl.BlockSpec((D_pad, D_pad), lambda i: (0, 0)),    # W_in  (VMEM-resident)
            pl.BlockSpec((1, D_pad), lambda i: (0, 0)),        # b_in
            pl.BlockSpec((D_pad, C_pad), lambda i: (0, 0)),    # codebook^T
            pl.BlockSpec((C_pad, D_pad), lambda i: (0, 0)),    # codebook
            pl.BlockSpec((1, C_pad), lambda i: (0, 0)),        # ||c||^2 (+pad penalty)
            pl.BlockSpec((D_pad, D_pad), lambda i: (0, 0)),    # W_out
            pl.BlockSpec((1, D_pad), lambda i: (0, 0)),        # b_out
        ],
        out_specs=(
            pl.BlockSpec((TILE_M, D_pad), lambda i: (i, 0)),   # out tile (lane-dense)
            pl.BlockSpec((TILE_M, 1), lambda i: (i, 0)),       # indices
            pl.BlockSpec((TILE_M, 1), lambda i: (i, 0)),       # per-row sq err
        ),
        compiler_params=pltpu.CompilerParams(
            dimension_semantics=("parallel",),                 # no cross-tile deps
            vmem_limit_bytes=VMEM_LIMIT,
        ),
        cost_estimate=cost,
    )(x_p, w_in_p, b_in_p, cbT_p, cb_p, c2, w_out_p, b_out_p)

    out = out_p[:M, :D].reshape(B, S, D)
    indices = idx_p[:M, 0].reshape(B, S)
    commit_loss = jnp.sum(sqerr_rows[:M, 0]) / jnp.float32(M * D)
    # output = (x, *rest) exactly as in the PyTorch module
    return out, indices, commit_loss


if __name__ == "__main__":
    B, S, DIM = 2, 8, 32
    CODEBOOK_SIZE = 64

    key = jax.random.PRNGKey(0)
    k_x, k_wi, k_bi, k_cb, k_wo, k_bo = jax.random.split(key, 6)

    x = jax.random.normal(k_x, (B, S, DIM), dtype=jnp.float32)
    params = {
        "w_in": jax.random.normal(k_wi, (DIM, DIM), dtype=jnp.float32) * 0.1,
        "b_in": jax.random.normal(k_bi, (DIM,), dtype=jnp.float32) * 0.1,
        "codebook": jax.random.normal(k_cb, (CODEBOOK_SIZE, DIM), dtype=jnp.float32),
        "w_out": jax.random.normal(k_wo, (DIM, DIM), dtype=jnp.float32) * 0.1,
        "b_out": jax.random.normal(k_bo, (DIM,), dtype=jnp.float32) * 0.1,
    }

    out, indices, commit_loss = jax.jit(sequential_forward)(x, params)
    jax.block_until_ready((out, indices, commit_loss))

    # sanity checks against a plain-JAX reference of the same forward
    h_ref = x.reshape(-1, DIM) @ params["w_in"] + params["b_in"]
    d_ref = (jnp.sum(params["codebook"] ** 2, axis=1)[None, :]
             - 2.0 * h_ref @ params["codebook"].T
             + jnp.sum(h_ref ** 2, axis=1, keepdims=True))
    idx_ref = jnp.argmin(d_ref, axis=-1)
    q_ref = params["codebook"][idx_ref]
    y_ref = (q_ref @ params["w_out"] + params["b_out"]).reshape(B, S, DIM)
    loss_ref = jnp.mean((q_ref - h_ref) ** 2)

    assert out.shape == (B, S, DIM)
    assert indices.shape == (B, S)
    assert commit_loss.shape == ()
    assert bool(jnp.all(indices == idx_ref.reshape(B, S)))
    assert bool(jnp.allclose(out, y_ref, atol=2e-4, rtol=2e-4))
    assert bool(jnp.allclose(commit_loss, loss_ref, atol=2e-4, rtol=2e-4))
    print("KERNEL_OK")
</pallas_src>

<mosaic_0001>
module attributes {stable_mosaic.version = 11 : i64} {
  func.func @_fused_kernel(%arg0: i32, %arg1: memref<16x128xf32, #tpu.memory_space<vmem>>, %arg2: memref<128x128xf32, #tpu.memory_space<vmem>>, %arg3: memref<1x128xf32, #tpu.memory_space<vmem>>, %arg4: memref<128x128xf32, #tpu.memory_space<vmem>>, %arg5: memref<128x128xf32, #tpu.memory_space<vmem>>, %arg6: memref<1x128xf32, #tpu.memory_space<vmem>>, %arg7: memref<128x128xf32, #tpu.memory_space<vmem>>, %arg8: memref<1x128xf32, #tpu.memory_space<vmem>>, %arg9: memref<16x128xf32, #tpu.memory_space<vmem>>, %arg10: memref<16x1xi32, #tpu.memory_space<vmem>>, %arg11: memref<16x1xf32, #tpu.memory_space<vmem>>) attributes {dimension_semantics = [#tpu.dimension_semantics<parallel>], iteration_bounds = array<i64: 1>, scalar_prefetch = 0 : i64, scratch_operands = 0 : i64, tpu.core_type = #tpu.core_type<tc>, window_params = [{transform_indices = @transform_0, window_bounds = array<i64: 16, 128>}, {pipeline_mode = #tpu.pipeline_mode<synchronous>, transform_indices = @transform_1, window_bounds = array<i64: 128, 128>}, {pipeline_mode = #tpu.pipeline_mode<synchronous>, transform_indices = @transform_2, window_bounds = array<i64: 1, 128>}, {pipeline_mode = #tpu.pipeline_mode<synchronous>, transform_indices = @transform_3, window_bounds = array<i64: 128, 128>}, {pipeline_mode = #tpu.pipeline_mode<synchronous>, transform_indices = @transform_4, window_bounds = array<i64: 128, 128>}, {pipeline_mode = #tpu.pipeline_mode<synchronous>, transform_indices = @transform_5, window_bounds = array<i64: 1, 128>}, {pipeline_mode = #tpu.pipeline_mode<synchronous>, transform_indices = @transform_6, window_bounds = array<i64: 128, 128>}, {pipeline_mode = #tpu.pipeline_mode<synchronous>, transform_indices = @transform_7, window_bounds = array<i64: 1, 128>}, {transform_indices = @transform_8, window_bounds = array<i64: 16, 128>}, {transform_indices = @transform_9, window_bounds = array<i64: 16, 1>}, {transform_indices = @transform_10, window_bounds = array<i64: 16, 1>}]} {
    %c0 = arith.constant 0 : index
    %c0_0 = arith.constant 0 : index
    %0 = vector.load %arg1[%c0, %c0_0] : memref<16x128xf32, #tpu.memory_space<vmem>>, vector<16x128xf32>
    %c0_1 = arith.constant 0 : index
    %c0_2 = arith.constant 0 : index
    %1 = vector.load %arg2[%c0_1, %c0_2] : memref<128x128xf32, #tpu.memory_space<vmem>>, vector<128x128xf32>
    %cst = arith.constant dense<0.000000e+00> : vector<16x128xf32>
    %2 = tpu.matmul %0, %1, %cst {dimension_numbers = #tpu.dot_dimension_numbers<[1], [0], [0], [1], [0, 0, 1, 1], [], []>} : vector<16x128xf32>, vector<128x128xf32>, vector<16x128xf32> -> vector<16x128xf32>
    %c0_3 = arith.constant 0 : index
    %c0_4 = arith.constant 0 : index
    %3 = vector.load %arg3[%c0_3, %c0_4] : memref<1x128xf32, #tpu.memory_space<vmem>>, vector<1x128xf32>
    %4 = vector.broadcast %3 : vector<1x128xf32> to vector<16x128xf32>
    %5 = arith.addf %2, %4 : vector<16x128xf32>
    %c0_5 = arith.constant 0 : index
    %c0_6 = arith.constant 0 : index
    %6 = vector.load %arg4[%c0_5, %c0_6] : memref<128x128xf32, #tpu.memory_space<vmem>>, vector<128x128xf32>
    %cst_7 = arith.constant dense<0.000000e+00> : vector<16x128xf32>
    %7 = tpu.matmul %5, %6, %cst_7 {dimension_numbers = #tpu.dot_dimension_numbers<[1], [0], [0], [1], [0, 0, 1, 1], [], []>} : vector<16x128xf32>, vector<128x128xf32>, vector<16x128xf32> -> vector<16x128xf32>
    %c0_8 = arith.constant 0 : index
    %c0_9 = arith.constant 0 : index
    %8 = vector.load %arg6[%c0_8, %c0_9] : memref<1x128xf32, #tpu.memory_space<vmem>>, vector<1x128xf32>
    %cst_10 = arith.constant 2.000000e+00 : f32
    %9 = vector.broadcast %cst_10 : f32 to vector<16x128xf32>
    %10 = arith.mulf %9, %7 : vector<16x128xf32>
    %11 = vector.broadcast %8 : vector<1x128xf32> to vector<16x128xf32>
    %12 = arith.subf %11, %10 : vector<16x128xf32>
    %cst_11 = arith.constant dense<0x7F800000> : vector<16xf32>
    %13 = vector.multi_reduction <minimumf>, %12, %cst_11 [1] : vector<16x128xf32> to vector<16xf32>
    %14 = vector.shape_cast %13 : vector<16xf32> to vector<16x1xf32>
    %15 = tpu.iota {dimensions = array<i32: 1>} : vector<16x128xi32>
    %16 = vector.broadcast %14 : vector<16x1xf32> to vector<16x128xf32>
    %17 = arith.cmpf oeq, %12, %16 : vector<16x128xf32>
    %c128_i32 = arith.constant 128 : i32
    %18 = vector.broadcast %c128_i32 : i32 to vector<16x128xi32>
    %19 = arith.select %17, %15, %18 : vector<16x128xi1>, vector<16x128xi32>
    %cst_12 = arith.constant dense<2147483647> : vector<16xi32>
    %20 = vector.multi_reduction <minsi>, %19, %cst_12 [1] : vector<16x128xi32> to vector<16xi32>
    %21 = vector.shape_cast %20 : vector<16xi32> to vector<16x1xi32>
    %c0_13 = arith.constant 0 : index
    %c0_14 = arith.constant 0 : index
    %22 = vector.load %arg10[%c0_13, %c0_14] : memref<16x1xi32, #tpu.memory_space<vmem>>, vector<16x1xi32>
    tpu.vector_store %arg10[%c0_13, %c0_14], %21 {strides = array<i32>} : memref<16x1xi32, #tpu.memory_space<vmem>>, vector<16x1xi32>,
    %23 = vector.broadcast %21 : vector<16x1xi32> to vector<16x128xi32>
    %24 = arith.cmpi eq, %15, %23 : vector<16x128xi32>
    %25 = arith.extui %24 : vector<16x128xi1> to vector<16x128xi32>
    %26 = arith.sitofp %25 : vector<16x128xi32> to vector<16x128xf32>
    %c0_15 = arith.constant 0 : index
    %c0_16 = arith.constant 0 : index
    %27 = vector.load %arg5[%c0_15, %c0_16] : memref<128x128xf32, #tpu.memory_space<vmem>>, vector<128x128xf32>
    %cst_17 = arith.constant dense<0.000000e+00> : vector<16x128xf32>
    %28 = tpu.matmul %26, %27, %cst_17 {dimension_numbers = #tpu.dot_dimension_numbers<[1], [0], [0], [1], [0, 0, 1, 1], [], []>} : vector<16x128xf32>, vector<128x128xf32>, vector<16x128xf32> -> vector<16x128xf32>
    %c0_18 = arith.constant 0 : index
    %c0_19 = arith.constant 0 : index
    %29 = vector.load %arg7[%c0_18, %c0_19] : memref<128x128xf32, #tpu.memory_space<vmem>>, vector<128x128xf32>
    %cst_20 = arith.constant dense<0.000000e+00> : vector<16x128xf32>
    %30 = tpu.matmul %28, %29, %cst_20 {dimension_numbers = #tpu.dot_dimension_numbers<[1], [0], [0], [1], [0, 0, 1, 1], [], []>} : vector<16x128xf32>, vector<128x128xf32>, vector<16x128xf32> -> vector<16x128xf32>
    %c0_21 = arith.constant 0 : index
    %c0_22 = arith.constant 0 : index
    %31 = vector.load %arg8[%c0_21, %c0_22] : memref<1x128xf32, #tpu.memory_space<vmem>>, vector<1x128xf32>
    %32 = vector.broadcast %31 : vector<1x128xf32> to vector<16x128xf32>
    %33 = arith.addf %30, %32 : vector<16x128xf32>
    %c0_23 = arith.constant 0 : index
    %c0_24 = arith.constant 0 : index
    %34 = vector.load %arg9[%c0_23, %c0_24] : memref<16x128xf32, #tpu.memory_space<vmem>>, vector<16x128xf32>
    tpu.vector_store %arg9[%c0_23, %c0_24], %33 {strides = array<i32>} : memref<16x128xf32, #tpu.memory_space<vmem>>, vector<16x128xf32>,
    %35 = arith.subf %28, %5 : vector<16x128xf32>
    %36 = arith.mulf %35, %35 : vector<16x128xf32>
    %cst_25 = arith.constant dense<0.000000e+00> : vector<16xf32>
    %37 = vector.multi_reduction <add>, %36, %cst_25 [1] : vector<16x128xf32> to vector<16xf32>
    %38 = vector.shape_cast %37 : vector<16xf32> to vector<16x1xf32>
    %c0_26 = arith.constant 0 : index
    %c0_27 = arith.constant 0 : index
    %39 = vector.load %arg11[%c0_26, %c0_27] : memref<16x1xf32, #tpu.memory_space<vmem>>, vector<16x1xf32>
    tpu.vector_store %arg11[%c0_26, %c0_27], %38 {strides = array<i32>} : memref<16x1xf32, #tpu.memory_space<vmem>>, vector<16x1xf32>,
    return
  }
  func.func @transform_0(%arg0: i32) -> (i32, i32) {
    %c0_i32 = arith.constant 0 : i32
    %c0_i32_0 = arith.constant 0 : i32
    return %arg0, %c0_i32 : i32, i32
  }
  func.func @transform_1(%arg0: i32) -> (i32, i32) {
    %c0_i32 = arith.constant 0 : i32
    %c0_i32_0 = arith.constant 0 : i32
    %c0_i32_1 = arith.constant 0 : i32
    return %c0_i32, %c0_i32_0 : i32, i32
  }
  func.func @transform_2(%arg0: i32) -> (i32, i32) {
    %c0_i32 = arith.constant 0 : i32
    %c0_i32_0 = arith.constant 0 : i32
    %c0_i32_1 = arith.constant 0 : i32
    return %c0_i32, %c0_i32_0 : i32, i32
  }
  func.func @transform_3(%arg0: i32) -> (i32, i32) {
    %c0_i32 = arith.constant 0 : i32
    %c0_i32_0 = arith.constant 0 : i32
    %c0_i32_1 = arith.constant 0 : i32
    return %c0_i32, %c0_i32_0 : i32, i32
  }
  func.func @transform_4(%arg0: i32) -> (i32, i32) {
    %c0_i32 = arith.constant 0 : i32
    %c0_i32_0 = arith.constant 0 : i32
    %c0_i32_1 = arith.constant 0 : i32
    return %c0_i32, %c0_i32_0 : i32, i32
  }
  func.func @transform_5(%arg0: i32) -> (i32, i32) {
    %c0_i32 = arith.constant 0 : i32
    %c0_i32_0 = arith.constant 0 : i32
    %c0_i32_1 = arith.constant 0 : i32
    return %c0_i32, %c0_i32_0 : i32, i32
  }
  func.func @transform_6(%arg0: i32) -> (i32, i32) {
    %c0_i32 = arith.constant 0 : i32
    %c0_i32_0 = arith.constant 0 : i32
    %c0_i32_1 = arith.constant 0 : i32
    return %c0_i32, %c0_i32_0 : i32, i32
  }
  func.func @transform_7(%arg0: i32) -> (i32, i32) {
    %c0_i32 = arith.constant 0 : i32
    %c0_i32_0 = arith.constant 0 : i32
    %c0_i32_1 = arith.constant 0 : i32
    return %c0_i32, %c0_i32_0 : i32, i32
  }
  func.func @transform_8(%arg0: i32) -> (i32, i32) {
    %c0_i32 = arith.constant 0 : i32
    %c0_i32_0 = arith.constant 0 : i32
    return %arg0, %c0_i32 : i32, i32
  }
  func.func @transform_9(%arg0: i32) -> (i32, i32) {
    %c0_i32 = arith.constant 0 : i32
    %c0_i32_0 = arith.constant 0 : i32
    return %arg0, %c0_i32 : i32, i32
  }
  func.func @transform_10(%arg0: i32) -> (i32, i32) {
    %c0_i32 = arith.constant 0 : i32
    %c0_i32_0 = arith.constant 0 : i32
    return %arg0, %c0_i32 : i32, i32
  }
}

</mosaic_0001>

<bundles_post_ra>
// kernel: squeeze.2
= control target key start
LH: loop header
LB: loop body
LE: loop exit
PB: predicated region body
PF: predicated region fallthrough
CT: control target
= control target key end

     0   :  { %s85_s0 = inlined_call_operand.vmem [shape: s32[16], index: 0, kind: input, shape index: {}]   ;;  %s86_s1 = inlined_call_operand.hbm [shape: s32[2,8], index: 1, kind: output, shape index: {}]  }
   0x1   :  { %v5_v0 = vld [vmem:[%s85_s0] sm:$0x1] }
   0x2   :  { %2 = vsyncpa [#allocation1], 0  ;;  %6 = vst [vmem:[#allocation3] sm:$0x1] %v5_v0  ;;  %vm8_vm0 = vcmask 64512   ;;  %s58_s0 = smov 120  }
   0x3   :  { %s59_s8 = smov [#allocation0]  }
   0x4   :  { %s26_s9 = sshll.u32 %s59_s8, 4  ;;  %s27_s9 = int_to_ptr.vmem [resolvable:$true] %s26_s9 }
   0x5   :  { %s34_s10 = scalar_lea.vmem %s27_s9, 32  ;;  %p39_p1 = scmp.lt.s32.totalorder %s27_s9, %s27_s9 }
   0x6   :  { %p35_p0 = scmp.ne.s32.totalorder %s27_s9, %s34_s10  ;;  %p40_p2 = scmp.lt.s32.totalorder %s34_s10, %s34_s10 }
   0x8   :  { %p41_p3 = por %p40_p2, %p39_p1 }
   0x9   :  { %v10_v1 = vld [vmem:[#allocation3] sm:$0x1]  }
   0xa   :  { %v7_v2 = vld [vmem:[#allocation3] sm:$0x1]   ;;  %11 = vrot.lane.b32.xlu0 %v10_v1, %s58_s0  ;;  %p42_p4 = pnand %p41_p3, %p35_p0 }
   0xb   :  { %9 = vst.msk [vmem:[#allocation2] sm:$0x1] %vm8_vm0, %v7_v2  }
  0x7c   :  { %v12_v3 = vpop.permute.xlu0 %11  }
  0x7d   :  { %15 = vst.msk [vmem:[#allocation2 + $0x1] sm:$0x1] %vm8_vm0, %v12_v3  }
  0x84   :  { %v19_v4 = vld [vmem:[#allocation2] sm:$0x3] }
  0x85   :  { %21 = vst [vmem:[#allocation0] sm:$0x3] %v19_v4 }
  0x86   :  { %45 = shalt.err (!%p42_p4)
}
  0x87   :  { %s46_s13 = scalar_lea.hbm %s86_s1, 32 }
  0x88   :  { %p47_p5 = scmp.ne.s32.totalorder %s86_s1, %s46_s13  ;;  %p50_p6 = scmp.lt.u32.totalorder %s46_s13, %s86_s1 }
  0x8a   :  { %p52_p7 = pnand %p50_p6, %p47_p5 }
  0x8c   :  { %55 = shalt.err (!%p52_p7)
}
  0x8d   :  { %29 = dma.vmem_to_hbm [thread:$0]  %s27_s9, 32, %s86_s1, [#allocation1]  }
  0x8e   :  { %56 = dma.done.wait [#allocation1], 32  }
  0x8f   :  { %57 = vsyncadd [#allocation1], 4294967264 }
  0x90   :  { %31 = vsyncpa [#allocation1], 1 }

// kernel: sequential_forward.1
= control target key start
LH: loop header
LB: loop body
LE: loop exit
PB: predicated region body
PF: predicated region fallthrough
CT: control target
= control target key end

     0   :  { %v238_v62 = vlaneseq  ;;  %vm272_vm4 = vcmask 7168   ;;  %s1149_s1 = inlined_call_operand.vmem [shape: f32[128,128], index: 1, kind: input, shape index: {}]   ;;  %s1150_s0 = inlined_call_operand.vmem [shape: f32[16,128], index: 0, kind: input, shape index: {}]   ;;  %s1151_s3 = inlined_call_operand.vmem [shape: f32[128,128], index: 3, kind: input, shape index: {}]   ;;  %s1152_s2 = inlined_call_operand.vmem [shape: f32[1,128], index: 2, kind: input, shape index: {}]   ;;  %s1153_s5 = inlined_call_operand.vmem [shape: f32[1,128], index: 5, kind: input, shape index: {}]   ;;  %s1154_s4 = inlined_call_operand.vmem [shape: f32[128,128], index: 4, kind: input, shape index: {}]   ;;  %s1155_s6 = inlined_call_operand.vmem [shape: f32[128,128], index: 6, kind: input, shape index: {}]   ;;  %s1156_s9 = inlined_call_operand.vmem [shape: s32[16,1], index: 9, kind: output, shape index: {1}]   ;;  %s1157_s10 = inlined_call_operand.vmem [shape: f32[16,1], index: 10, kind: output, shape index: {2}]   ;;  %s1158_s7 = inlined_call_operand.vmem [shape: f32[1,128], index: 7, kind: input, shape index: {}]   ;;  %s1159_s8 = inlined_call_operand.vmem [shape: f32[16,128], index: 8, kind: output, shape index: {0}]  }
   0x1   :  { %v34_v0 = vld [vmem:[%s1149_s1] sm:$0xff]  ;;  %v35_v1 = vld [vmem:[%s1149_s1 + $0x8] sm:$0xff]  ;;  %v36_v2 = vld [vmem:[%s1149_s1 + $0x10] sm:$0xff] }
   0x2   :  { %v713_v3 = vpack.c.bf16 %v35_v1, %v34_v0  ;;  %v37_v4 = vld [vmem:[%s1149_s1 + $0x18] sm:$0xff]  ;;  %v38_v6 = vld [vmem:[%s1149_s1 + $0x20] sm:$0xff]  ;;  %v39_v7 = vld [vmem:[%s1149_s1 + $0x28] sm:$0xff]  ;;  %v1012_v63 = vand.u32 127, %v238_v62 }
   0x3   :  { %v717_v5 = vpack.c.bf16 %v37_v4, %v36_v2  ;;  %v721_v8 = vpack.c.bf16 %v39_v7, %v38_v6  ;;  %v40_v9 = vld [vmem:[%s1149_s1 + $0x30] sm:$0xff]  ;;  %v41_v10 = vld [vmem:[%s1149_s1 + $0x38] sm:$0xff]  ;;  %v32_v11 = vld [vmem:[%s1150_s0] sm:$0xff] }
   0x4   :  { %714 = vmatprep.subr.bf16.mxu0 %v713_v3  ;;  %605 = vmatprep.mubr.f32.mxu0 %v32_v11  ;;  %v132_v12 = vld [vmem:[%s1151_s3] sm:$0xff]  ;;  %v133_v13 = vld [vmem:[%s1151_s3 + $0x8] sm:$0xff]  ;;  %v134_v14 = vld [vmem:[%s1151_s3 + $0x10] sm:$0xff]  ;;  %v725_v20 = vpack.c.bf16 %v41_v10, %v40_v9 }
   0x5   :  { %716 = vmatpush3.bf16.msra.mxu0 %v713_v3  ;;  %v745_v15 = vpack.c.bf16 %v133_v13, %v132_v12  ;;  %v135_v16 = vld [vmem:[%s1151_s3 + $0x18] sm:$0xff]  ;;  %v136_v18 = vld [vmem:[%s1151_s3 + $0x20] sm:$0xff]  ;;  %v137_v19 = vld [vmem:[%s1151_s3 + $0x28] sm:$0xff] }
   0x6   :  { %718 = vmatprep.subr.bf16.mxu0 %v717_v5  ;;  %v749_v17 = vpack.c.bf16 %v135_v16, %v134_v14  ;;  %v42_v21 = vld [vmem:[%s1149_s1 + $0x40] sm:$0xff]  ;;  %v43_v22 = vld [vmem:[%s1149_s1 + $0x48] sm:$0xff]  ;;  %v753_v23 = vpack.c.bf16 %v137_v19, %v136_v18  ;;  %v138_v24 = vld [vmem:[%s1151_s3 + $0x30] sm:$0xff] }
   0x7   :  { %746 = vmatprep.subr.bf16.mxu1 %v745_v15  ;;  %v139_v25 = vld [vmem:[%s1151_s3 + $0x38] sm:$0xff]  ;;  %v729_v26 = vpack.c.bf16 %v43_v22, %v42_v21  ;;  %v44_v27 = vld [vmem:[%s1149_s1 + $0x50] sm:$0xff]  ;;  %v140_v30 = vld [vmem:[%s1151_s3 + $0x40] sm:$0xff] }
   0x8   :  { %748 = vmatpush3.bf16.msra.mxu1 %v745_v15  ;;  %v45_v28 = vld [vmem:[%s1149_s1 + $0x58] sm:$0xff]  ;;  %v757_v29 = vpack.c.bf16 %v139_v25, %v138_v24  ;;  %v141_v31 = vld [vmem:[%s1151_s3 + $0x48] sm:$0xff]  ;;  %v46_v33 = vld [vmem:[%s1149_s1 + $0x60] sm:$0xff] }
   0x9   :  { %720 = vmatpush3.bf16.msra.mxu0 %v717_v5  ;;  %750 = vmatprep.subr.bf16.mxu1 %v749_v17  ;;  %v733_v32 = vpack.c.bf16 %v45_v28, %v44_v27  ;;  %v47_v34 = vld [vmem:[%s1149_s1 + $0x68] sm:$0xff]  ;;  %v761_v35 = vpack.c.bf16 %v141_v31, %v140_v30  ;;  %v142_v36 = vld [vmem:[%s1151_s3 + $0x50] sm:$0xff]  ;;  %v143_v37 = vld [vmem:[%s1151_s3 + $0x58] sm:$0xff] }
   0xa   :  { %722 = vmatprep.subr.bf16.mxu0 %v721_v8  ;;  %v737_v38 = vpack.c.bf16 %v47_v34, %v46_v33  ;;  %v48_v39 = vld [vmem:[%s1149_s1 + $0x70] sm:$0xff]  ;;  %v49_v40 = vld [vmem:[%s1149_s1 + $0x78] sm:$0xff]  ;;  %v765_v41 = vpack.c.bf16 %v143_v37, %v142_v36  ;;  %v144_v42 = vld [vmem:[%s1151_s3 + $0x60] sm:$0xff] }
   0xb   :  { %v145_v43 = vld [vmem:[%s1151_s3 + $0x68] sm:$0xff]  ;;  %v741_v44 = vpack.c.bf16 %v49_v40, %v48_v39  ;;  %v146_v47 = vld [vmem:[%s1151_s3 + $0x70] sm:$0xff]  ;;  %v147_v48 = vld [vmem:[%s1151_s3 + $0x78] sm:$0xff] }
   0xc   :  { %752 = vmatpush3.bf16.msra.mxu1 %v749_v17  ;;  %v769_v45 = vpack.c.bf16 %v145_v43, %v144_v42  ;;  %v33_v46 = vld [vmem:[%s1150_s0 + $0x8] sm:$0xff]  ;;  %v773_v49 = vpack.c.bf16 %v147_v48, %v146_v47  ;;  %v494_v50 = vld [vmem:[%s1152_s2] ss:$0 sm:$0xff]  ;;  %v283_v10 = vld [vmem:[%s1154_s4 + $0x10] sm:$0xff] }
   0xd   :  { %724 = vmatpush3.bf16.msra.mxu0 %v721_v8  ;;  %754 = vmatprep.subr.bf16.mxu1 %v753_v23  ;;  %v495_v57 = vld [vmem:[%s1153_s5] ss:$0 sm:$0xff]  ;;  %v282_v9 = vld [vmem:[%s1154_s4 + $0x8] sm:$0xff]  ;;  %v284_v12 = vld [vmem:[%s1154_s4 + $0x18] sm:$0xff] }
   0xe   :  { %726 = vmatprep.subr.bf16.mxu0 %v725_v20  ;;  %v281_v8 = vld [vmem:[%s1154_s4] sm:$0xff]  ;;  %v781_v13 = vpack.c.bf16 %v284_v12, %v283_v10  ;;  %v286_v15 = vld [vmem:[%s1154_s4 + $0x28] sm:$0xff]  ;;  %v287_v17 = vld [vmem:[%s1154_s4 + $0x30] sm:$0xff]  ;;  %v842_v12 = vmov 1.0  }
   0xf   :  { %v777_v11 = vpack.c.bf16 %v282_v9, %v281_v8  ;;  %v285_v14 = vld [vmem:[%s1154_s4 + $0x20] sm:$0xff]  ;;  %v288_v18 = vld [vmem:[%s1154_s4 + $0x38] sm:$0xff]  ;;  %v290_v21 = vld [vmem:[%s1154_s4 + $0x48] sm:$0xff] }
  0x10   :  { %756 = vmatpush3.bf16.msra.mxu1 %v753_v23  ;;  %v785_v16 = vpack.c.bf16 %v286_v15, %v285_v14  ;;  %v789_v19 = vpack.c.bf16 %v288_v18, %v287_v17  ;;  %v291_v23 = vld [vmem:[%s1154_s4 + $0x50] sm:$0xff]  ;;  %v292_v24 = vld [vmem:[%s1154_s4 + $0x58] sm:$0xff]  ;;  %v293_v34 = vld [vmem:[%s1154_s4 + $0x60] sm:$0xff] }
  0x11   :  { %728 = vmatpush3.bf16.msra.mxu0 %v725_v20  ;;  %758 = vmatprep.subr.bf16.mxu1 %v757_v29  ;;  %v289_v20 = vld [vmem:[%s1154_s4 + $0x40] sm:$0xff]  ;;  %v797_v25 = vpack.c.bf16 %v292_v24, %v291_v23  ;;  %v295_v37 = vld [vmem:[%s1154_s4 + $0x70] sm:$0xff]  ;;  %v377_v47 = vld [vmem:[%s1155_s6 + $0x28] sm:$0xff] }
  0x12   :  { %730 = vmatprep.subr.bf16.mxu0 %v729_v26  ;;  %v793_v22 = vpack.c.bf16 %v290_v21, %v289_v20  ;;  %v372_v40 = vld [vmem:[%s1155_s6] sm:$0xff]  ;;  %v374_v42 = vld [vmem:[%s1155_s6 + $0x10] sm:$0xff] }
  0x14   :  { %760 = vmatpush3.bf16.msra.mxu1 %v757_v29 }
  0x15   :  { %732 = vmatpush3.bf16.msra.mxu0 %v729_v26  ;;  %762 = vmatprep.subr.bf16.mxu1 %v761_v35 }
  0x16   :  { %734 = vmatprep.subr.bf16.mxu0 %v733_v32 }
  0x18   :  { %764 = vmatpush3.bf16.msra.mxu1 %v761_v35  ;;  %v294_v35 = vld [vmem:[%s1154_s4 + $0x68] sm:$0xff] }
  0x19   :  { %736 = vmatpush3.bf16.msra.mxu0 %v733_v32  ;;  %766 = vmatprep.subr.bf16.mxu1 %v765_v41  ;;  %v801_v36 = vpack.c.bf16 %v294_v35, %v293_v34 }
  0x1a   :  { %738 = vmatprep.subr.bf16.mxu0 %v737_v38 }
  0x1c   :  { %768 = vmatpush3.bf16.msra.mxu1 %v765_v41  ;;  %v373_v41 = vld [vmem:[%s1155_s6 + $0x8] sm:$0xff] }
  0x1d   :  { %740 = vmatpush3.bf16.msra.mxu0 %v737_v38  ;;  %770 = vmatprep.subr.bf16.mxu1 %v769_v45  ;;  %v296_v38 = vld [vmem:[%s1154_s4 + $0x78] sm:$0xff]  ;;  %v809_v43 = vpack.c.bf16 %v373_v41, %v372_v40 }
  0x1e   :  { %742 = vmatprep.subr.bf16.mxu0 %v741_v44  ;;  %v805_v39 = vpack.c.bf16 %v296_v38, %v295_v37 }
  0x20   :  { %772 = vmatpush3.bf16.msra.mxu1 %v769_v45 }
  0x21   :  { %744 = vmatpush3.bf16.msra.mxu0 %v741_v44  ;;  %774 = vmatprep.subr.bf16.mxu1 %v773_v49  ;;  %v375_v44 = vld [vmem:[%s1155_s6 + $0x18] sm:$0xff] }
  0x22   :  { %778 = vmatprep.subr.bf16.mxu0 %v777_v11  ;;  %v813_v45 = vpack.c.bf16 %v375_v44, %v374_v42 }
  0x24   :  { %606 = vmatmul.mubr.f32.vlgmr.msra.gmra.mrb[0].mxu0 %v33_v46  ;;  %776 = vmatpush3.bf16.msra.mxu1 %v773_v49  ;;  %v376_v46 = vld [vmem:[%s1155_s6 + $0x20] sm:$0xff]  ;;  %v378_v49 = vld [vmem:[%s1155_s6 + $0x30] sm:$0xff] }
  0x25   :  { %780 = vmatpush3.bf16.msra.mxu0 %v777_v11  ;;  %810 = vmatprep.subr.bf16.mxu1 %v809_v43  ;;  %v817_v48 = vpack.c.bf16 %v377_v47, %v376_v46 }
  0x26   :  { %782 = vmatprep.subr.bf16.mxu0 %v781_v13 }
  0x29   :  { %784 = vmatpush3.bf16.msra.mxu0 %v781_v13 }
  0x2a   :  { %786 = vmatprep.subr.bf16.mxu0 %v785_v16 }
  0x2d   :  { %788 = vmatpush3.bf16.msra.mxu0 %v785_v16 }
  0x2e   :  { %790 = vmatprep.subr.bf16.mxu0 %v789_v19 }
  0x31   :  { %792 = vmatpush3.bf16.msra.mxu0 %v789_v19 }
  0x32   :  { %794 = vmatprep.subr.bf16.mxu0 %v793_v22 }
  0x35   :  { %796 = vmatpush3.bf16.msra.mxu0 %v793_v22 }
  0x36   :  { %798 = vmatprep.subr.bf16.mxu0 %v797_v25 }
  0x39   :  { %800 = vmatpush3.bf16.msra.mxu0 %v797_v25 }
  0x3a   :  { %802 = vmatprep.subr.bf16.mxu0 %v801_v36 }
  0x3d   :  { %804 = vmatpush3.bf16.msra.mxu0 %v801_v36 }
  0x3e   :  { %806 = vmatprep.subr.bf16.mxu0 %v805_v39 }
  0x41   :  { %808 = vmatpush3.bf16.msra.mxu0 %v805_v39 }
  0xf7   :  { %v607_v51 = vpop.f32.mrb[0].mxu0 }
  0xf8   :  { %v123_v52 = vpop.f32.mrb[1].mxu0  ;;  %v1005_v54 = vadd.f32 %v607_v51, %v494_v50 }
  0xf9   :  { %v1003_v53 = vadd.f32 %v494_v50, %v123_v52  ;;  %v379_v50 = vld [vmem:[%s1155_s6 + $0x38] sm:$0xff]  ;;  %v380_v52 = vld [vmem:[%s1155_s6 + $0x40] sm:$0xff] }
  0xfa   :  { %v821_v51 = vpack.c.bf16 %v379_v50, %v378_v49 }
  0xfb   :  { %640 = vmatprep.mubr.f32.mxu1 %v1003_v53 }
  0xfc   :  { %641 = vmatmul.mubr.f32.vlgmr.msra.gmra.mrb[0].mxu1 %v1005_v54 }
  0xfd   :  { %812 = vmatpush3.bf16.msra.mxu1 %v809_v43 }
  0xfe   :  { %814 = vmatprep.subr.bf16.mxu1 %v813_v45 }
 0x101   :  { %816 = vmatpush3.bf16.msra.mxu1 %v813_v45 }
 0x102   :  { %818 = vmatprep.subr.bf16.mxu1 %v817_v48 }
 0x105   :  { %820 = vmatpush3.bf16.msra.mxu1 %v817_v48 }
 0x106   :  { %822 = vmatprep.subr.bf16.mxu1 %v821_v51 }
 0x109   :  { %824 = vmatpush3.bf16.msra.mxu1 %v821_v51 }
 0x1cf   :  { %v642_v55 = vpop.f32.mrb[0].mxu1 }
 0x1d0   :  { %v214_v56 = vpop.f32.mrb[1].mxu1  ;;  %v225_v59 = vmul.f32 2.0, %v642_v55  ;;  %v381_v55 = vld [vmem:[%s1155_s6 + $0x48] sm:$0xff] }
 0x1d1   :  { %v224_v58 = vmul.f32 2.0, %v214_v56  ;;  %v825_v56 = vpack.c.bf16 %v381_v55, %v380_v52 }
 0x1d2   :  { %v233_v61 = vsub.f32 %v495_v57, %v225_v59 }
 0x1d3   :  { %v232_v60 = vsub.f32 %v495_v57, %v224_v58  ;;  %v382_v57 = vld [vmem:[%s1155_s6 + $0x50] sm:$0xff]  ;;  %v383_v58 = vld [vmem:[%s1155_s6 + $0x58] sm:$0xff]  ;;  %826 = vmatprep.subr.bf16.mxu1 %v825_v56 }
 0x1d4   :  { %v829_v59 = vpack.c.bf16 %v383_v58, %v382_v57  ;;  %828 = vmatpush3.bf16.msra.mxu1 %v825_v56 }
 0x1d5   :  { %234 = vmin.xlane.f32.xlu0 %v232_v60 }
 0x1d6   :  { %830 = vmatprep.subr.bf16.mxu1 %v829_v59 }
 0x1d8   :  { %832 = vmatpush3.bf16.msra.mxu1 %v829_v59 }
 0x1d9   :  { %236 = vmin.xlane.f32.xlu0 %v233_v61 }
 0x262   :  { %v235_v0 = vpop.xlane.xlu0 %234 }
 0x263   :  { %vm240_vm0 = vcmp.eq.f32.partialorder %v232_v60, %v235_v0  ;;  %v384_v60 = vld [vmem:[%s1155_s6 + $0x60] sm:$0xff]  ;;  %v386_v0 = vld [vmem:[%s1155_s6 + $0x70] sm:$0xff] }
 0x264   :  { %v242_v1 = vsel %vm240_vm0, %v1012_v63, 128 }
 0x265   :  { %v245_v2 = vshra.s32 %v242_v1, 16  ;;  %v244_v26 = vand.u32 65535, %v242_v1  ;;  %v387_v1 = vld [vmem:[%s1155_s6 + $0x78] sm:$0xff] }
 0x266   :  { %v237_v3 = vpop.xlane.xlu0 %236 }
 0x267   :  { %vm241_vm1 = vcmp.eq.f32.partialorder %v233_v61, %v237_v3  ;;  %v247_v4 = vcvt.s32.f32 %v245_v2  ;;  %v246_v29 = vcvt.s32.f32 %v244_v26  ;;  %v385_v61 = vld [vmem:[%s1155_s6 + $0x68] sm:$0xff]  ;;  %v837_v2 = vpack.c.bf16 %v387_v1, %v386_v0 }
 0x268   :  { %v243_v5 = vsel %vm241_vm1, %v1012_v63, 128  ;;  %v833_v62 = vpack.c.bf16 %v385_v61, %v384_v60 }
 0x269   :  { %248 = vmin.xlane.f32.xlu1 %v247_v4  ;;  %v259_v6 = vshra.s32 %v243_v5, 16  ;;  %v258_v27 = vand.u32 65535, %v243_v5 }
 0x26a   :  { %834 = vmatprep.subr.bf16.mxu1 %v833_v62 }
 0x26b   :  { %v261_v7 = vcvt.s32.f32 %v259_v6  ;;  %v260_v32 = vcvt.s32.f32 %v258_v27  ;;  %836 = vmatpush3.bf16.msra.mxu1 %v833_v62 }
 0x26c   :  { %838 = vmatprep.subr.bf16.mxu1 %v837_v2 }
 0x26d   :  { %262 = vmin.xlane.f32.xlu1 %v261_v7 }
 0x26f   :  { %840 = vmatpush3.bf16.msra.mxu1 %v837_v2 }
 0x2f6   :  { %v1052_v28 = vpop.xlane.xlu1 %248 }
 0x2f7   :  { %vm250_vm2 = vcmp.eq.f32.partialorder %v247_v4, %v1052_v28  ;;  %v255_v3 = vcvt.f32.s32 %v1052_v28 }
 0x2f8   :  { %v251_v30 = vsel %vm250_vm2, %v246_v29, inf }
 0x2f9   :  { %252 = vmin.xlane.f32.xlu0 %v251_v30  ;;  %v256_v5 = vshll.u32 %v255_v3, 16 }
 0x2fa   :  { %v1055_v31 = vpop.xlane.xlu1 %262 }
 0x2fb   :  { %vm264_vm3 = vcmp.eq.f32.partialorder %v261_v7, %v1055_v31  ;;  %v269_v6 = vcvt.f32.s32 %v1055_v31 }
 0x2fc   :  { %v265_v33 = vsel %vm264_vm3, %v260_v32, inf }
 0x2fd   :  { %266 = vmin.xlane.f32.xlu1 %v265_v33  ;;  %v270_v10 = vshll.u32 %v269_v6, 16 }
 0x386   :  { %v253_v4 = vpop.xlane.xlu0 %252 }
 0x387   :  { %v254_v7 = vcvt.f32.s32 %v253_v4 }
 0x389   :  { %v257_v8 = vadd.s32 %v256_v5, %v254_v7 }
 0x38a   :  { %v267_v9 = vpop.xlane.xlu1 %266 }
 0x38b   :  { %v268_v11 = vcvt.f32.s32 %v267_v9  ;;  %vm275_vm5 = vcmp.eq.s32.totalorder %v1012_v63, %v257_v8  ;;  %273 = vst.msk [vmem:[%s1156_s9] sm:$0xff] %vm272_vm4, %v257_v8 }
 0x38c   :  { %675 = vmatprep.mubr.msk.f32.mxu0 %vm275_vm5, %v842_v12 }
 0x38d   :  { %v271_v13 = vadd.s32 %v270_v10, %v268_v11 }
 0x38f   :  { %vm276_vm6 = vcmp.eq.s32.totalorder %v1012_v63, %v271_v13  ;;  %274 = vst.msk [vmem:[%s1156_s9 + $0x8] sm:$0xff] %vm272_vm4, %v271_v13 }
 0x390   :  { %676 = vmatmul.mubr.msk.f32.vlgmr.msra.gmra.mrb[2].mxu0 %vm276_vm6, %v842_v12 }
 0x463   :  { %v677_v14 = vpop.f32.mrb[2].mxu0 }
 0x464   :  { %v473_v15 = vsub.f32 %v677_v14, %v1005_v54  ;;  %v363_v16 = vpop.f32.mrb[3].mxu0 }
 0x465   :  { %v472_v17 = vsub.f32 %v363_v16, %v1003_v53  ;;  %710 = vmatprep.mubr.f32.mxu1 %v363_v16  ;;  %v500_v53 = vld [vmem:[%s1158_s7] ss:$0 sm:$0xff] }
 0x466   :  { %711 = vmatmul.mubr.f32.vlgmr.msra.gmra.mrb[2].mxu1 %v677_v14  ;;  %v475_v18 = vmul.f32 %v473_v15, %v473_v15 }
 0x467   :  { %v474_v19 = vmul.f32 %v472_v17, %v472_v17 }
 0x468   :  { %478 = vadd.xlane.f32.xlu1 %v475_v18 }
 0x469   :  { %476 = vadd.xlane.f32.xlu0 %v474_v19 }
 0x4f5   :  { %v479_v20 = vpop.xlane.xlu1 %478 }
 0x4f6   :  { %481 = vst.msk [vmem:[%s1157_s10 + $0x8] sm:$0xff] %vm272_vm4, %v479_v20  ;;  %v477_v63 = vpop.xlane.xlu0 %476 }
 0x4f7   :  { %480 = vst.msk [vmem:[%s1157_s10] sm:$0xff] %vm272_vm4, %v477_v63 }
 0x539   :  { %v712_v54 = vpop.f32.mrb[2].mxu1 }
 0x53a   :  { %v467_v21 = vadd.f32 %v712_v54, %v500_v53  ;;  %v461_v22 = vpop.f32.mrb[3].mxu1 }
 0x53b   :  { %v462_v23 = vadd.f32 %v500_v53, %v461_v22 }
 0x53c   :  { %471 = vst [vmem:[%s1159_s8 + $0x8] sm:$0xff] %v467_v21 }
 0x53d   :  { %470 = vst [vmem:[%s1159_s8] sm:$0xff] %v462_v23 }

</bundles_post_ra>
